<compile_context>
chip_gen: v7x
topology: tpu7x:2x2x1
jax: 0.10.0
libtpu: 0.0.40
codegen_flags: <defaults>
</compile_context>

<pallas_src>
import functools
import math

import jax
import jax.numpy as jnp
from jax import lax
from jax.experimental import pallas as pl
from jax.experimental.pallas import tpu as pltpu


def _encode_block(idx, tm, mult, num_classes):
    """Full-width one-hot encoding of a (tm, mult) int32 index block.

    Returns (tm, mult * num_classes) float32.  Built with a single compare chain
    (no lane-axis concatenate): lane l in slot m is 1 iff idx[:, m] + m*C == l.
    """
    w = mult * num_classes
    lane = lax.broadcasted_iota(jnp.int32, (tm, w), 1)          # absolute lane id
    # target lane for each row/slot; later slots override via lane >= m*C
    target = jnp.broadcast_to(idx[:, 0:1], (tm, w))
    for m in range(1, mult):
        target = jnp.where(lane >= m * num_classes,
                           idx[:, m:m + 1] + m * num_classes,
                           target)
    return (target == lane).astype(jnp.float32)


def _one_hot_kernel(idx_ref, out_ref, *, mult, num_classes):
    """std_noise == 0 path: pure one-hot, single store."""
    tm = idx_ref.shape[0]
    out_ref[...] = _encode_block(idx_ref[...], tm, mult, num_classes)


def _one_hot_noise_kernel(idx_ref, noise_ref, out_ref, *, mult, num_classes, std_noise):
    """std_noise > 0 path: one-hot + precomputed standard-normal noise * std."""
    tm = idx_ref.shape[0]
    enc = _encode_block(idx_ref[...], tm, mult, num_classes)
    out_ref[...] = enc + noise_ref[...] * jnp.float32(std_noise)


def feat_one_hot_encoding(feat, num_classes, mult=1, std_noise=0.0, key=None, tm=512):
    """Pallas equivalent of FeatOneHotEncoding.forward.

    feat: int array, shape (..., mult). Returns float32 (..., mult, num_classes).
    """
    assert feat.shape[-1] == mult, f"{feat.shape}, {mult}"
    lead = feat.shape[:-1]
    r = math.prod(lead) if lead else 1
    w = mult * num_classes
    idx2d = feat.reshape(r, mult).astype(jnp.int32)

    # Pick the largest row tile <= tm that is a multiple of 8, then pad rows to a
    # multiple of it (padding rows encode class 0 and are sliced off afterwards).
    r_pad8 = max(8, ((r + 7) // 8) * 8)
    tm_eff = max(8, (min(tm, r_pad8) // 8) * 8)
    r_pad = ((r + tm_eff - 1) // tm_eff) * tm_eff
    if r_pad != r:
        idx2d = jnp.pad(idx2d, ((0, r_pad - r), (0, 0)))
    grid = (r_pad // tm_eff,)

    idx_spec = pl.BlockSpec((tm_eff, mult), lambda i: (i, 0))
    out_spec = pl.BlockSpec((tm_eff, w), lambda i: (i, 0))
    out_shape = jax.ShapeDtypeStruct((r_pad, w), jnp.float32)
    cparams = pltpu.CompilerParams(dimension_semantics=("parallel",))

    if float(std_noise) > 0.0:
        if key is None:
            key = jax.random.PRNGKey(0)
        noise2d = jax.random.normal(key, (r_pad, w), dtype=jnp.float32)
        kernel = functools.partial(_one_hot_noise_kernel, mult=mult,
                                   num_classes=num_classes, std_noise=float(std_noise))
        out2d = pl.pallas_call(
            kernel,
            out_shape=out_shape,
            grid=grid,
            in_specs=[idx_spec, pl.BlockSpec((tm_eff, w), lambda i: (i, 0))],
            out_specs=out_spec,
            compiler_params=cparams,
        )(idx2d, noise2d)
    else:
        kernel = functools.partial(_one_hot_kernel, mult=mult, num_classes=num_classes)
        out2d = pl.pallas_call(
            kernel,
            out_shape=out_shape,
            grid=grid,
            in_specs=[idx_spec],
            out_specs=out_spec,
            compiler_params=cparams,
        )(idx2d)

    if r_pad != r:
        out2d = out2d[:r]
    return out2d.reshape(*lead, mult, num_classes)


if __name__ == "__main__":
    key = jax.random.PRNGKey(0)

    # Small shapes: batch=2, seq=8, mult=2, num_classes=21 (e.g. amino-acid alphabet)
    B, N, MULT, NUM_CLASSES = 2, 8, 2, 21
    feat = jax.random.randint(key, (B, N, MULT), minval=0, maxval=NUM_CLASSES,
                              dtype=jnp.int32)

    # Module's runtime assertions (data-dependent; checked on host before launch)
    assert int(jnp.min(feat)) >= 0
    assert int(jnp.max(feat)) < NUM_CLASSES

    # std_noise = 0 path: exact one-hot, compare against jax.nn.one_hot reference
    out = feat_one_hot_encoding(feat, NUM_CLASSES, mult=MULT, std_noise=0.0)
    out = jax.block_until_ready(out)
    ref = jax.nn.one_hot(feat, NUM_CLASSES, dtype=jnp.float32)
    assert out.shape == (B, N, MULT, NUM_CLASSES), out.shape
    assert out.dtype == jnp.float32
    assert jnp.array_equal(out, ref), "one-hot mismatch"

    # std_noise > 0 path: noise generated outside the kernel, added in-kernel.
    STD = 0.1
    out_noisy = feat_one_hot_encoding(feat, NUM_CLASSES, mult=MULT,
                                      std_noise=STD, key=jax.random.PRNGKey(42))
    out_noisy = jax.block_until_ready(out_noisy)
    assert out_noisy.shape == (B, N, MULT, NUM_CLASSES)
    diff = out_noisy - ref
    assert float(jnp.max(jnp.abs(diff))) < 6.0 * STD + 1e-6  # noise stays ~N(0, std)
    assert float(jnp.max(jnp.abs(diff))) > 0.0               # noise actually applied

    print("KERNEL_OK")
</pallas_src>

<mosaic_0001>
module attributes {stable_mosaic.version = 11 : i64} {
  func.func @_one_hot_kernel(%arg0: i32, %arg1: memref<16x2xi32, #tpu.memory_space<vmem>>, %arg2: memref<16x42xf32, #tpu.memory_space<vmem>>) attributes {dimension_semantics = [#tpu.dimension_semantics<parallel>], iteration_bounds = array<i64: 1>, scalar_prefetch = 0 : i64, scratch_operands = 0 : i64, tpu.core_type = #tpu.core_type<tc>, window_params = [{transform_indices = @transform_0, window_bounds = array<i64: 16, 2>}, {transform_indices = @transform_1, window_bounds = array<i64: 16, 42>}]} {
    %c0 = arith.constant 0 : index
    %c0_0 = arith.constant 0 : index
    %0 = vector.load %arg1[%c0, %c0_0] : memref<16x2xi32, #tpu.memory_space<vmem>>, vector<16x2xi32>
    %1 = tpu.iota {dimensions = array<i32: 1>} : vector<16x42xi32>
    %2 = vector.extract_strided_slice %0 {offsets = [0, 0], sizes = [16, 1], strides = [1, 1]} : vector<16x2xi32> to vector<16x1xi32>
    %3 = vector.shape_cast %2 : vector<16x1xi32> to vector<16x1xi32>
    %4 = vector.broadcast %3 : vector<16x1xi32> to vector<16x42xi32>
    %c21_i32 = arith.constant 21 : i32
    %5 = vector.broadcast %c21_i32 : i32 to vector<16x42xi32>
    %6 = arith.cmpi sge, %1, %5 : vector<16x42xi32>
    %7 = vector.extract_strided_slice %0 {offsets = [0, 1], sizes = [16, 1], strides = [1, 1]} : vector<16x2xi32> to vector<16x1xi32>
    %c21_i32_1 = arith.constant 21 : i32
    %8 = vector.broadcast %c21_i32_1 : i32 to vector<16x1xi32>
    %9 = arith.addi %7, %8 : vector<16x1xi32>
    %10 = vector.shape_cast %9 : vector<16x1xi32> to vector<16x1xi32>
    %11 = vector.broadcast %10 : vector<16x1xi32> to vector<16x42xi32>
    %12 = arith.select %6, %11, %4 : vector<16x42xi1>, vector<16x42xi32>
    %13 = arith.cmpi eq, %12, %1 : vector<16x42xi32>
    %14 = arith.extui %13 : vector<16x42xi1> to vector<16x42xi32>
    %15 = arith.sitofp %14 : vector<16x42xi32> to vector<16x42xf32>
    %c0_2 = arith.constant 0 : index
    %c0_3 = arith.constant 0 : index
    %16 = vector.load %arg2[%c0_2, %c0_3] : memref<16x42xf32, #tpu.memory_space<vmem>>, vector<16x42xf32>
    tpu.vector_store %arg2[%c0_2, %c0_3], %15 {strides = array<i32>} : memref<16x42xf32, #tpu.memory_space<vmem>>, vector<16x42xf32>,
    return
  }
  func.func @transform_0(%arg0: i32) -> (i32, i32) {
    %c0_i32 = arith.constant 0 : i32
    %c0_i32_0 = arith.constant 0 : i32
    return %arg0, %c0_i32 : i32, i32
  }
  func.func @transform_1(%arg0: i32) -> (i32, i32) {
    %c0_i32 = arith.constant 0 : i32
    %c0_i32_0 = arith.constant 0 : i32
    return %arg0, %c0_i32 : i32, i32
  }
}

</mosaic_0001>

<bundles_post_ra>
// kernel: tpu_custom_call.1
= control target key start
LH: loop header
LB: loop body
LE: loop exit
PB: predicated region body
PF: predicated region fallthrough
CT: control target
= control target key end

     0   :  { %s124_s0 = inlined_call_operand.vmem [shape: s32[16,2], index: 0, kind: input, shape index: {}]   ;;  %s125_s1 = inlined_call_operand.hbm [shape: f32[16,42], index: 1, kind: output, shape index: {}]  }
   0x1   :  { %v9_v0 = vld [vmem:[%s124_s0] sm:$0xff]  ;;  %v10_v1 = vld [vmem:[%s124_s0 + $0x8] sm:$0xff] }
   0x2   :  { %6 = vsyncpa [#allocation3], 0  ;;  %v90_v2 = vmov 0   ;;  %v91_v3 = vmov 1   ;;  %v20_v4 = vadd.s32 21, %v9_v0  ;;  %v21_v5 = vadd.s32 21, %v10_v1 }
   0x3   :  { %63 = vset.pattern.permute.xlu0 %v90_v2  ;;  %64 = vset.pattern.permute.xlu1 %v91_v3  ;;  %v11_v6 = vlaneseq  ;;  %vm36_vm1 = vcmask 343040   ;;  %s92_s0 = smov [#allocation2]   ;;  %v93_v11 = vmov 0.0  }
   0x4   :  { %14 = vperm.xlu0 %63, %v9_v0   ;;  %23 = vperm.xlu1 %64, %v20_v4   ;;  %s44_s10 = sshll.u32 %s92_s0, 4  ;;  %s45_s10 = int_to_ptr.vmem [resolvable:$true] %s44_s10 }
   0x5   :  { %v12_v7 = vand.u32 127, %v11_v6  ;;  %s66_s11 = scalar_lea.vmem %s45_s10, 256  ;;  %p71_p1 = scmp.lt.s32.totalorder %s45_s10, %s45_s10 }
   0x6   :  { %p67_p0 = scmp.ne.s32.totalorder %s45_s10, %s66_s11  ;;  %p72_p2 = scmp.lt.s32.totalorder %s66_s11, %s66_s11 }
   0x7   :  { %vm19_vm0 = vcmp.ge.s32.totalorder %v12_v7, 21 }
   0x8   :  { %17 = vperm.xlu0 %63, %v10_v1   ;;  %26 = vperm.xlu1 %64, %v21_v5   ;;  %p73_p3 = por %p72_p2, %p71_p1 }
   0xa   :  { %p74_p4 = pnand %p73_p3, %p67_p0 }
   0xc   :  { %65 = vset.pattern.permute.xlu0 %v91_v3 }
  0x83   :  { %v15_v8 = vpop.permute.xlu0 %14  ;;  %v24_v9 = vpop.permute.xlu1 %23 }
  0x84   :  { %v28_v10 = vsel %vm19_vm0, %v24_v9, %v15_v8 }
  0x85   :  { %vm30_vm2 = vcmp.eq.s32.totalorder %v28_v10, %v12_v7 }
  0x86   :  { %v55_v12 = vsel %vm30_vm2, 1.0, %v93_v11 }
  0x87   :  { %v18_v13 = vpop.permute.xlu0 %17  ;;  %37 = vst.msk [vmem:[#allocation2] sm:$0xff] %vm36_vm1, %v55_v12  ;;  %v27_v14 = vpop.permute.xlu1 %26 }
  0x88   :  { %v29_v15 = vsel %vm19_vm0, %v27_v14, %v18_v13 }
  0x89   :  { %vm31_vm3 = vcmp.eq.s32.totalorder %v29_v15, %v12_v7 }
  0x8a   :  { %v56_v16 = vsel %vm31_vm3, 1.0, %v93_v11 }
  0x8b   :  { %38 = vst.msk [vmem:[#allocation2 + $0x8] sm:$0xff] %vm36_vm1, %v56_v16 }
  0x8c   :  { %77 = shalt.err (!%p74_p4)
}
  0x8d   :  { %s78_s14 = scalar_lea.hbm %s125_s1, 256 }
  0x8e   :  { %p79_p5 = scmp.ne.s32.totalorder %s125_s1, %s78_s14  ;;  %p82_p6 = scmp.lt.u32.totalorder %s78_s14, %s125_s1 }
  0x90   :  { %p84_p7 = pnand %p82_p6, %p79_p5 }
  0x92   :  { %87 = shalt.err (!%p84_p7)
}
  0x93   :  { %s94_s19 = smov 128   ;;  %s95_s20 = smov 8  }
  0x94   :  { %50 = dma.vmem_to_hbm [thread:$0]  %s45_s10, 256, %s125_s1, [#allocation3], %s94_s19, %s94_s19, %s95_s20  }
  0x95   :  { %88 = dma.done.wait [#allocation3], 256  }
  0x96   :  { %89 = vsyncadd [#allocation3], 4294967040 }
  0x97   :  { %54 = vsyncpa [#allocation3], 1 }

</bundles_post_ra>
